<compile_context>
chip_gen: v7x
topology: tpu7x:2x2x1
jax: 0.10.0
libtpu: 0.0.40
codegen_flags: <defaults>
</compile_context>

<pallas_src>
import functools

import jax
import jax.numpy as jnp
from jax.experimental import pallas as pl
from jax.experimental.pallas import tpu as pltpu


# ----------------------------- Pallas kernel --------------------------------
def _weighted_ce_kernel(logits_ref, wrow_ref, picked_ref, out_ref, *,
                        n_rows, tile_rows):
    """Per-tile weighted CE partial sum, broadcast into a (1,1,128) out block."""
    x = logits_ref[...].astype(jnp.float32)          # (T, V)  native-dtype load
    w = wrow_ref[...]                                # (T, 1)  f32, 0 => ignored row
    picked = picked_ref[...]                         # (T, 1)  f32 raw picked logit

    # Numerically stable log-partition; the picked logit is already gathered.
    row_max = jnp.max(x, axis=1, keepdims=True)                      # (T, 1)
    sumexp = jnp.sum(jnp.exp(x - row_max), axis=1, keepdims=True)    # (T, 1)
    logz = jnp.log(sumexp) + row_max                                 # (T, 1)

    # Explicit row-validity mask (static N) guards the ragged last row tile
    # (garbage logits rows) independently of how the partial block is filled.
    row = jax.lax.broadcasted_iota(jnp.int32, w.shape, 0)            # (T, 1)
    row_ok = (pl.program_id(0) * tile_rows + row) < n_rows

    loss = jnp.where(row_ok & (w > 0.0), w * (logz - picked), 0.0)   # (T, 1)
    out_ref[...] = jnp.full(out_ref.shape, jnp.sum(loss), out_ref.dtype)


def weighted_ce_sum_pallas(logits, targets, weight, tile=256):
    """sum_i weight[y_i] * (-log_softmax(logits_i)[y_i]) over rows with y_i != -100."""
    N, V = logits.shape
    targets = targets.astype(jnp.int32)

    # Row tile: multiple of 8 (or == N when N < 8), capped so small launches
    # still yield >= ~4 tiles (both v7x TensorCores get work), never above N.
    if N >= 8:
        quarter = max(128, ((N // 4) // 8) * 8)
        tile_eff = max(8, min(tile, quarter, (N // 8) * 8))
    else:
        tile_eff = N
    n_tiles = pl.cdiv(N, tile_eff)
    rows_p = n_tiles * tile_eff

    # Cheap O(N) per-row prep: validity, class weight, picked raw logit.
    valid = targets != -100
    tgt_safe = jnp.clip(targets, 0, V - 1)
    # TODO(synk): out-of-range targets (>= V, != -100) are clipped here instead
    # of raising like torch.nn.functional.cross_entropy would.
    w_row = jnp.where(valid, weight.astype(jnp.float32)[tgt_safe], 0.0)
    picked = jnp.take_along_axis(logits, tgt_safe[:, None], axis=1)[:, 0]
    picked = picked.astype(jnp.float32)
    w_row = jnp.pad(w_row, (0, rows_p - N)).reshape(-1, 1)
    picked = jnp.pad(picked, (0, rows_p - N)).reshape(-1, 1)

    # VMEM budget: double-buffered native-dtype input block + f32 temporaries.
    Vp = ((V + 127) // 128) * 128
    in_blk = 2 * tile_eff * Vp * logits.dtype.itemsize
    tmp_blk = 3 * tile_eff * Vp * 4
    vmem_limit = min(64 * 1024 * 1024,
                     max(32 * 1024 * 1024,
                         int(1.5 * (in_blk + tmp_blk)) + (1 << 20)))

    cost = pl.CostEstimate(
        flops=int(4 * N * V),
        transcendentals=int(N * V),
        bytes_accessed=int(N * V * logits.dtype.itemsize + rows_p * 8
                           + n_tiles * 512),
    )

    kernel = functools.partial(_weighted_ce_kernel, n_rows=N, tile_rows=tile_eff)
    partial_sums = pl.pallas_call(
        kernel,
        out_shape=jax.ShapeDtypeStruct((n_tiles, 1, 128), jnp.float32),
        grid=(n_tiles,),
        in_specs=[
            pl.BlockSpec((tile_eff, V), lambda i: (i, 0)),   # full-extent vocab dim
            pl.BlockSpec((tile_eff, 1), lambda i: (i, 0)),
            pl.BlockSpec((tile_eff, 1), lambda i: (i, 0)),
        ],
        out_specs=pl.BlockSpec((1, 1, 128), lambda i: (i, 0, 0)),
        compiler_params=pltpu.CompilerParams(
            dimension_semantics=("parallel",),
            vmem_limit_bytes=vmem_limit),
        cost_estimate=cost,
    )(logits, w_row, picked)

    return jnp.sum(partial_sums[:, 0, 0])


# ------------------------------ Glue (plain JAX) -----------------------------
def box_cxcywh_to_xyxy(box):
    cx, cy, w, h = box[..., 0], box[..., 1], box[..., 2], box[..., 3]
    return jnp.stack([cx - 0.5 * w, cy - 0.5 * h, cx + 0.5 * w, cy + 0.5 * h],
                     axis=-1)


class SetCriterion:
    """JAX port of the Pix2Seq SetCriterion (single-process, training branch)."""

    def __init__(self, num_classes, weight_dict, eos_coef, num_bins, num_vocal):
        self.num_bins = num_bins
        self.num_vocal = num_vocal
        self.num_classes = num_classes
        self.weight_dict = weight_dict
        empty_weight = jnp.ones((num_vocal,), dtype=jnp.float32)
        self.empty_weight = empty_weight.at[-1].set(eos_coef)

    def build_target_seq(self, targets, max_objects=200):
        seqs = []
        for t in targets:
            label = t['labels'].astype(jnp.int32)
            box = t['boxes'].astype(jnp.float32)
            h, w = t['size'][0], t['size'][1]
            label = label[:, None] + self.num_bins + 1
            box = box * jnp.stack([w, h, w, h])
            box = box_cxcywh_to_xyxy(box)
            box = jnp.clip(jnp.floor(box / 1333.0 * self.num_bins).astype(jnp.int32),
                           0, self.num_bins)
            target_tokens = jnp.concatenate([box, label], axis=1).reshape(-1)
            end_token = jnp.array([self.num_vocal - 2], dtype=jnp.int32)
            num_noise = max_objects - label.shape[0]
            fake = jnp.zeros((num_noise, 5), dtype=jnp.int32)
            fake = fake.at[:, :3].set(-100)
            fake = fake.at[:, 3].set(self.num_vocal - 1)
            fake = fake.at[:, 4].set(self.num_vocal - 2)
            seqs.append(jnp.concatenate([target_tokens, end_token,
                                         fake.reshape(-1)], axis=0))
        return jnp.stack(seqs, axis=0)

    def __call__(self, outputs, targets, max_objects=200):
        target_seq = self.build_target_seq(targets, max_objects=max_objects)
        num_pos = jnp.maximum((target_seq > -1).sum().astype(jnp.float32), 1.0)
        # TODO(synk): eval-mode branch (list of variable-length pred_seq_logits)
        # and distributed all_reduce of num_pos are not ported.
        pred_seq_logits = outputs['pred_seq_logits'].reshape(-1, self.num_vocal)
        flat_target = target_seq.reshape(-1)
        loss_sum = weighted_ce_sum_pallas(pred_seq_logits, flat_target,
                                          self.empty_weight)
        return {'loss_seq': loss_sum / num_pos}


# ------------------------------ Reference check ------------------------------
def _reference_loss(logits, targets, weight, num_pos):
    logp = jax.nn.log_softmax(logits.astype(jnp.float32), axis=-1)
    valid = targets != -100
    tgt_safe = jnp.where(valid, targets, 0)
    picked = jnp.take_along_axis(logp, tgt_safe[:, None], axis=1)[:, 0]
    w = weight[tgt_safe]
    loss = jnp.where(valid, -w * picked, 0.0)
    return jnp.sum(loss) / num_pos


if __name__ == "__main__":
    key = jax.random.PRNGKey(0)

    # Small synthetic config consistent with Pix2Seq vocabulary layout.
    num_bins = 16
    num_classes = 4
    num_vocal = num_bins + 1 + num_classes + 2   # coords + classes + end + noise
    eos_coef = 0.1
    max_objects = 8                              # seq_len = 5*max_objects + 1 = 41
    batch = 2
    seq_len = 5 * max_objects + 1

    criterion = SetCriterion(num_classes=num_classes,
                             weight_dict={'loss_seq': 1.0},
                             eos_coef=eos_coef,
                             num_bins=num_bins,
                             num_vocal=num_vocal)

    # Deterministic synthetic targets (list of dicts, like the PyTorch module).
    k1, k2, k3, k4, k5 = jax.random.split(key, 5)
    targets = []
    n_objs = [3, 5]
    box_keys = [k1, k2]
    lab_keys = [k3, k4]
    for b in range(batch):
        n = n_objs[b]
        cxcy = jax.random.uniform(box_keys[b], (n, 2), minval=0.2, maxval=0.8)
        wh = jax.random.uniform(lab_keys[b], (n, 2), minval=0.05, maxval=0.3)
        boxes = jnp.concatenate([cxcy, wh], axis=1)                 # cxcywh in [0,1]
        labels = jax.random.randint(jax.random.fold_in(k5, b), (n,), 0, num_classes)
        targets.append({'labels': labels,
                        'boxes': boxes,
                        'size': jnp.array([480.0, 640.0], dtype=jnp.float32)})

    # Model output logits (B, L, V).
    pred_seq_logits = jax.random.normal(jax.random.fold_in(key, 99),
                                        (batch, seq_len, num_vocal),
                                        dtype=jnp.float32)
    outputs = {'pred_seq_logits': pred_seq_logits}

    losses = criterion(outputs, targets, max_objects=max_objects)
    loss_seq = jax.block_until_ready(losses['loss_seq'])

    # Check 1: full criterion vs. pure-JAX reference (unaligned vocab, V=23).
    tgt_flat = criterion.build_target_seq(targets, max_objects=max_objects).reshape(-1)
    num_pos = jnp.maximum((tgt_flat > -1).sum().astype(jnp.float32), 1.0)
    ref = _reference_loss(pred_seq_logits.reshape(-1, num_vocal), tgt_flat,
                          criterion.empty_weight, num_pos)
    assert jnp.allclose(loss_seq, ref, rtol=1e-5, atol=1e-4), (loss_seq, ref)

    # Check 2: direct kernel test on a lane-aligned vocab with a ragged last
    # row tile (exercises the in-kernel row mask).
    V2, N2 = 256, 100
    logits2 = jax.random.normal(jax.random.fold_in(key, 7), (N2, V2), jnp.float32)
    tgt2 = jax.random.randint(jax.random.fold_in(key, 8), (N2,), 0, V2)
    drop = jax.random.uniform(jax.random.fold_in(key, 9), (N2,)) < 0.2
    tgt2 = jnp.where(drop, -100, tgt2)
    w2 = jnp.ones((V2,), jnp.float32).at[-1].set(0.1)
    got2 = jax.block_until_ready(weighted_ce_sum_pallas(logits2, tgt2, w2))
    ref2 = _reference_loss(logits2, tgt2, w2, 1.0)
    assert jnp.allclose(got2, ref2, rtol=1e-5, atol=1e-3), (got2, ref2)

    # Check 3: bf16 logits go through the kernel in their native dtype.
    logits3 = logits2.astype(jnp.bfloat16)
    got3 = jax.block_until_ready(weighted_ce_sum_pallas(logits3, tgt2, w2))
    ref3 = _reference_loss(logits3, tgt2, w2, 1.0)
    assert jnp.allclose(got3, ref3, rtol=1e-4, atol=1e-2), (got3, ref3)

    print("KERNEL_OK")
</pallas_src>

<mosaic_0001>
module attributes {stable_mosaic.version = 11 : i64} {
  func.func @_weighted_ce_kernel(%arg0: i32, %arg1: memref<80x23xf32, #tpu.memory_space<vmem>>, %arg2: memref<80x1xf32, #tpu.memory_space<vmem>>, %arg3: memref<80x1xf32, #tpu.memory_space<vmem>>, %arg4: memref<1x1x128xf32, #tpu.memory_space<vmem>>) attributes {dimension_semantics = [#tpu.dimension_semantics<parallel>], iteration_bounds = array<i64: 2>, scalar_prefetch = 0 : i64, scratch_operands = 0 : i64, tpu.core_type = #tpu.core_type<tc>, window_params = [{transform_indices = @transform_0, window_bounds = array<i64: 80, 23>}, {transform_indices = @transform_1, window_bounds = array<i64: 80, 1>}, {transform_indices = @transform_2, window_bounds = array<i64: 80, 1>}, {transform_indices = @transform_3, window_bounds = array<i64: 1, 1, 128>}]} {
    %c0 = arith.constant 0 : index
    %c0_0 = arith.constant 0 : index
    %0 = vector.load %arg1[%c0, %c0_0] : memref<80x23xf32, #tpu.memory_space<vmem>>, vector<80x23xf32>
    %c0_1 = arith.constant 0 : index
    %c0_2 = arith.constant 0 : index
    %1 = vector.load %arg2[%c0_1, %c0_2] : memref<80x1xf32, #tpu.memory_space<vmem>>, vector<80x1xf32>
    %c0_3 = arith.constant 0 : index
    %c0_4 = arith.constant 0 : index
    %2 = vector.load %arg3[%c0_3, %c0_4] : memref<80x1xf32, #tpu.memory_space<vmem>>, vector<80x1xf32>
    %cst = arith.constant dense<0xFF800000> : vector<80xf32>
    %3 = vector.multi_reduction <maximumf>, %0, %cst [1] : vector<80x23xf32> to vector<80xf32>
    %4 = vector.shape_cast %3 : vector<80xf32> to vector<80x1xf32>
    %5 = vector.broadcast %4 : vector<80x1xf32> to vector<80x23xf32>
    %6 = arith.subf %0, %5 : vector<80x23xf32>
    %7 = math.exp %6 : vector<80x23xf32>
    %cst_5 = arith.constant dense<0.000000e+00> : vector<80xf32>
    %8 = vector.multi_reduction <add>, %7, %cst_5 [1] : vector<80x23xf32> to vector<80xf32>
    %9 = vector.shape_cast %8 : vector<80xf32> to vector<80x1xf32>
    %10 = math.log %9 : vector<80x1xf32>
    %11 = arith.addf %10, %4 : vector<80x1xf32>
    %12 = tpu.iota {dimensions = array<i32: 0>} : vector<80x1xi32>
    %c80_i32 = arith.constant 80 : i32
    %13 = arith.muli %arg0, %c80_i32 : i32
    %14 = vector.broadcast %13 : i32 to vector<80x1xi32>
    %15 = arith.addi %14, %12 : vector<80x1xi32>
    %c82_i32 = arith.constant 82 : i32
    %16 = vector.broadcast %c82_i32 : i32 to vector<80x1xi32>
    %17 = arith.cmpi slt, %15, %16 : vector<80x1xi32>
    %cst_6 = arith.constant 0.000000e+00 : f32
    %18 = vector.broadcast %cst_6 : f32 to vector<80x1xf32>
    %19 = arith.cmpf ogt, %1, %18 : vector<80x1xf32>
    %20 = arith.andi %17, %19 : vector<80x1xi1>
    %21 = arith.subf %11, %2 : vector<80x1xf32>
    %22 = arith.mulf %1, %21 : vector<80x1xf32>
    %cst_7 = arith.constant 0.000000e+00 : f32
    %23 = vector.broadcast %cst_7 : f32 to vector<80x1xf32>
    %24 = arith.select %20, %22, %23 : vector<80x1xi1>, vector<80x1xf32>
    %25 = vector.shape_cast %24 : vector<80x1xf32> to vector<1x80x1xf32>
    %cst_8 = arith.constant dense<0.000000e+00> : vector<1xf32>
    %26 = vector.multi_reduction <add>, %25, %cst_8 [1, 2] : vector<1x80x1xf32> to vector<1xf32>
    %27 = vector.shape_cast %26 : vector<1xf32> to vector<1x1x1xf32>
    %28 = vector.extract %27[0, 0, 0] : f32 from vector<1x1x1xf32>
    %29 = vector.broadcast %28 : f32 to vector<1x1x128xf32>
    %c0_9 = arith.constant 0 : index
    %c0_10 = arith.constant 0 : index
    %c0_11 = arith.constant 0 : index
    %30 = vector.load %arg4[%c0_9, %c0_10, %c0_11] : memref<1x1x128xf32, #tpu.memory_space<vmem>>, vector<1x1x128xf32>
    tpu.vector_store %arg4[%c0_9, %c0_10, %c0_11], %29 {strides = array<i32>} : memref<1x1x128xf32, #tpu.memory_space<vmem>>, vector<1x1x128xf32>,
    return
  }
  func.func @transform_0(%arg0: i32) -> (i32, i32) {
    %c0_i32 = arith.constant 0 : i32
    %c0_i32_0 = arith.constant 0 : i32
    return %arg0, %c0_i32 : i32, i32
  }
  func.func @transform_1(%arg0: i32) -> (i32, i32) {
    %c0_i32 = arith.constant 0 : i32
    %c0_i32_0 = arith.constant 0 : i32
    return %arg0, %c0_i32 : i32, i32
  }
  func.func @transform_2(%arg0: i32) -> (i32, i32) {
    %c0_i32 = arith.constant 0 : i32
    %c0_i32_0 = arith.constant 0 : i32
    return %arg0, %c0_i32 : i32, i32
  }
  func.func @transform_3(%arg0: i32) -> (i32, i32, i32) {
    %c0_i32 = arith.constant 0 : i32
    %c0_i32_0 = arith.constant 0 : i32
    %c0_i32_1 = arith.constant 0 : i32
    return %arg0, %c0_i32, %c0_i32_0 : i32, i32, i32
  }
}

</mosaic_0001>

<bundles_post_ra>
// kernel: tpu_custom_call.1
= control target key start
LH: loop header
LB: loop body
LE: loop exit
PB: predicated region body
PF: predicated region fallthrough
CT: control target
= control target key end

     0   :  { %8 = vsyncpa [#allocation3], 0  ;;  %s1120_s0 = inlined_call_operand.vmem [shape: f32[82,23], index: 0, kind: input, shape index: {}]   ;;  %s1121_s1 = inlined_call_operand.vmem [shape: f32[160,1], index: 1, kind: input, shape index: {}]   ;;  %s1122_s2 = inlined_call_operand.vmem [shape: f32[160,1], index: 2, kind: input, shape index: {}]   ;;  %s1123_s3 = inlined_call_operand.hbm [shape: f32[2,1,128], index: 3, kind: output, shape index: {}]  }
   0x1   :  { %10 = vsyncpa [#allocation3 + $0x1], 0  ;;  %s767_s12 = smov 0   ;;  %s769_s13 = smov 0  }
   0x2   :  { %s771_s14 = smov 0   ;;  %s773_s15 = smov 0  }
   0x3 LB: > { %s788_s16 = sadd.s32 4294967295, %s744_s15   ;;  %s591_s17 = sadd.s32 4294967294, %s744_s15   ;;  %s744_s15 = sphi %s773_s15, %s1145_s15   ;;  %s740_s14 = sphi %s771_s14, %s1144_s14   ;;  %s736_s13 = sphi %s769_s13, %s1143_s13   ;;  %s732_s12 = sphi %s767_s12, %s1142_s12  }
   0x4   : > { %s792_s18 = sadd.s32 1, %s744_s15   ;;  %s101_s19 = sadd.s32 1, %s740_s14 }
   0x5   : > { %s98_s20 = ssub.s32 %s744_s15, %s792_s18  ;;  %p111_p0 = scmp.ne.s32.totalorder %s740_s14, %s736_s13 }
   0x6   : > { %p99_p1 = scmp.eq.s32.totalorder %s98_s20, 0  ;;  %p112_p2 = scmp.eq.s32.totalorder %s788_s16, 1 }
   0x7   : > { %p117_p3 = scmp.ne.s32.totalorder %s736_s13, %s732_s12  ;;  %p118_p4 = scmp.eq.s32.totalorder %s591_s17, 1 }
   0x8   : > { %s803_s21 = scalar_select %p99_p1, %s740_s14, %s101_s19  }
   0x9   : > { %p805_p5 = por %p112_p2, %p111_p0  ;;  %p809_p6 = por %p118_p4, %p117_p3 }
   0xa   : > { %p594_p7 = scmp.ge.s32.totalorder %s744_s15, 1  ;;  %p171_p8 = scmp.lt.s32.totalorder %s744_s15, 3 }
   0xc   : > { %p172_p9 = pnand %p594_p7, %p171_p8 }
   0xd   : > { %s816_s24 = smul.u32 (!%p172_p9), 10, %s788_s16  ;;  %vm264_vm0 = vcmask (!%p172_p9), 187392   ;;  %vm468_vm3 = vcmask (!%p172_p9), 7168   ;;  %s206_s11 = sand.u32 (!%p172_p9), 1, %s736_s13  }
   0xe   : > { %175 = sbr.rel (%p172_p9) target bundleno = 589 (0x24d), region = 32  ;;  %s207_s17 = scalar_lea.vmem (!%p172_p9), [#allocation2], %s206_s11 }
   0xf   : > { %p213_p10 = scmp.lt.s32.totalorder (!%p172_p9), %s816_s24, 10  ;;  %p223_p11 = scmp.lt.s32.totalorder (!%p172_p9), %s816_s24, 19 }
  0x10   : > { %s396_s30 = smul.u32 (!%p172_p9), 80, %s788_s16  ;;  %s512_s19 = sshll.u32 (!%p172_p9), %s207_s17, 4  ;;  %s1075_s19 = int_to_ptr.vmem [resolvable:$true] %s512_s19 }
  0x11   : > { %s598_s20 = sshll.u32 (!%p172_p9), %s788_s16, 4  ;;  %s500_s28 = scalar_lea.sflag (!%p172_p9), [#allocation3], %s206_s11 }
  0x12   : > { %s1080_s27 = scalar_lea.hbm (!%p172_p9), %s1123_s3, %s598_s20  ;;  %s746_s16 = smov (!%p172_p9), [#allocation2]  }
  0x15   : > { %s214_s25 = scalar_select %p213_p10, %s816_s24, 10 }
  0x16   : > { %s1147_s24 = smov (!%p223_p11, %s816_s24), 19 }
  0x17   : > { %s595_s26 = sshll.u32 %s214_s25, 3  ;;  %s596_s4 = sshll.u32 %s1147_s24, 3 }
  0x18   : > { %s216_s29 = scalar_lea.vmem %s1120_s0, %s595_s26  ;;  %s884_s7 = scalar_lea.vmem %s1121_s1, %s596_s4 }
  0x19   : > { %v234_v0 = vld [vmem:[%s216_s29] sm:$0xff]  ;;  %v236_v1 = vld [vmem:[%s216_s29 + $0x10] sm:$0xff]  ;;  %v235_v2 = vld [vmem:[%s216_s29 + $0x8] sm:$0xff]  ;;  %s894_s10 = scalar_lea.vmem %s1122_s2, %s596_s4 }
  0x1a   : > { %v265_v3 = vsel %vm264_vm0, %v234_v0, -inf  ;;  %v271_v4 = vsel %vm264_vm0, %v236_v1, -inf  ;;  %v237_v5 = vld [vmem:[%s216_s29 + $0x18] sm:$0xff]  ;;  %v268_v6 = vsel %vm264_vm0, %v235_v2, -inf  ;;  %v238_v8 = vld [vmem:[%s216_s29 + $0x20] sm:$0xff]  ;;  %v239_v9 = vld [vmem:[%s216_s29 + $0x28] sm:$0xff] }
  0x1b   : > { %266 = vmax.xlane.f32.xlu0 %v265_v3  ;;  %272 = vmax.xlane.f32.xlu1 %v271_v4  ;;  %v274_v7 = vsel %vm264_vm0, %v237_v5, -inf  ;;  %v277_v10 = vsel %vm264_vm0, %v238_v8, -inf  ;;  %v280_v11 = vsel %vm264_vm0, %v239_v9, -inf  ;;  %v240_v12 = vld [vmem:[%s216_s29 + $0x30] sm:$0xff]  ;;  %v241_v13 = vld [vmem:[%s216_s29 + $0x38] sm:$0xff]  ;;  %v242_v16 = vld [vmem:[%s216_s29 + $0x40] sm:$0xff] }
  0x1c   : > { %v283_v14 = vsel %vm264_vm0, %v240_v12, -inf  ;;  %v286_v15 = vsel %vm264_vm0, %v241_v13, -inf  ;;  %v243_v17 = vld [vmem:[%s216_s29 + $0x48] sm:$0xff]  ;;  %v289_v18 = vsel %vm264_vm0, %v242_v16, -inf  ;;  %s682_s29 = scalar_lea.vmem %s1075_s19, 16 }
  0x1d   : > { %v292_v19 = vsel %vm264_vm0, %v243_v17, -inf  ;;  %p683_p12 = scmp.ne.s32.totalorder %s1075_s19, %s682_s29 }
  0x1f   : > { %269 = vmax.xlane.f32.xlu0 %v268_v6  ;;  %275 = vmax.xlane.f32.xlu1 %v274_v7  ;;  %v385_v6 = vlaneseq  ;;  %p684_p13 = pnand %p683_p12, %p805_p5 }
  0x21   : > { %p685_p0 = pneg %p684_p13 }
  0x23   : > { %278 = vmax.xlane.f32.xlu0 %v277_v10  ;;  %281 = vmax.xlane.f32.xlu1 %v280_v11  ;;  %v878_v11 = vstv %s396_s30  ;;  %s686_s30 = sshll.u32 %s746_s16, 4  ;;  %s687_s30 = int_to_ptr.vmem [resolvable:$false] %s686_s30 }
  0x24   : > { %s688_s4 = scalar_lea.vmem %s687_s30, 32  ;;  %p689_p1 = scmp.lt.s32.totalorder %s1075_s19, %s687_s30 }
  0x25   : > { %p690_p2 = scmp.lt.s32.totalorder %s688_s4, %s682_s29 }
  0x27   : > { %284 = vmax.xlane.f32.xlu0 %v283_v14  ;;  %287 = vmax.xlane.f32.xlu1 %v286_v15  ;;  %p691_p3 = por %p690_p2, %p689_p1 }
  0x29   : > { %p692_p4 = pnand %p691_p3, %p685_p0 }
  0x2b   : > { %290 = vmax.xlane.f32.xlu0 %v289_v18  ;;  %293 = vmax.xlane.f32.xlu1 %v292_v19  ;;  %v244_v19 = vld [vmem:[%s884_s7] sm:$0xff] }
  0x2c   : > { %vm418_vm2 = vcmp.gt.f32.partialorder %v244_v19, 0.0 }
  0xa8   : > { %v833_v20 = vpop.xlane.xlu0 %266  ;;  %v835_v21 = vpop.xlane.xlu1 %272 }
  0xa9   : > { %v295_v22 = vsub.f32 %v234_v0, %v833_v20  ;;  %v297_v23 = vsub.f32 %v236_v1, %v835_v21 }
  0xab   : > { %v305_v24 = vmul.f32 1.442695, %v295_v22  ;;  %v309_v25 = vmul.f32 1.442695, %v297_v23 }
  0xac   : > { %v839_v26 = vpop.xlane.xlu0 %269  ;;  %v841_v27 = vpop.xlane.xlu1 %275 }
  0xad   : > { %642 = vpow2.f32 %v305_v24  ;;  %v296_v28 = vsub.f32 %v235_v2, %v839_v26  ;;  %v298_v29 = vsub.f32 %v237_v5, %v841_v27  ;;  %v899_v24 = vld [vmem:[%s884_s7 + $0x8] sm:$0xff] }
  0xae   : > { %644 = vpow2.f32 %v309_v25  ;;  %vm419_vm5 = vcmp.gt.f32.partialorder %v899_v24, 0.0 }
  0xaf   : > { %v307_v30 = vmul.f32 1.442695, %v296_v28  ;;  %v311_v31 = vmul.f32 1.442695, %v298_v29 }
  0xb0   : > { %v845_v32 = vpop.xlane.xlu0 %278  ;;  %v847_v33 = vpop.xlane.xlu1 %281 }
  0xb1   : > { %646 = vpow2.f32 %v307_v30  ;;  %v299_v34 = vsub.f32 %v238_v8, %v845_v32  ;;  %v300_v35 = vsub.f32 %v239_v9, %v847_v33  ;;  %v876_v8 = vshrl.u32 %v385_v6, 7  ;;  %v908_v30 = vld [vmem:[%s884_s7 + $0x10] sm:$0xff] }
  0xb2   : > { %648 = vpow2.f32 %v311_v31  ;;  %vm420_vm7 = vcmp.gt.f32.partialorder %v908_v30, 0.0 }
  0xb3   : > { %v313_v36 = vmul.f32 1.442695, %v299_v34  ;;  %v315_v37 = vmul.f32 1.442695, %v300_v35  ;;  %v389_v14 = vadd.s32 24, %v876_v8  ;;  %v398_v15 = vadd.s32 %v878_v11, %v876_v8 }
  0xb4   : > { %v851_v38 = vpop.xlane.xlu0 %284  ;;  %v853_v39 = vpop.xlane.xlu1 %287  ;;  %v390_v18 = vadd.s32 32, %v876_v8  ;;  %v391_v31 = vadd.s32 40, %v876_v8 }
  0xb5   : > { %650 = vpow2.f32 %v313_v36  ;;  %v301_v40 = vsub.f32 %v240_v12, %v851_v38  ;;  %v302_v41 = vsub.f32 %v241_v13, %v853_v39  ;;  %v387_v12 = vadd.s32 8, %v876_v8  ;;  %v254_v36 = vld [vmem:[%s894_s10] sm:$0xff] }
  0xb6   : > { %652 = vpow2.f32 %v315_v37  ;;  %v388_v13 = vadd.s32 16, %v876_v8  ;;  %v905_v28 = vadd.s32 %v878_v11, %v389_v14  ;;  %vm408_vm1 = vcmp.lt.s32.totalorder %v398_v15, 82  ;;  %v913_v37 = vld [vmem:[%s884_s7 + $0x18] sm:$0xff]  ;;  %v258_v14 = vld [vmem:[%s894_s10 + $0x20] sm:$0xff] }
  0xb7   : > { %v643_v42 = vpop.eup %642  ;;  %v317_v43 = vmul.f32 1.442695, %v301_v40  ;;  %v319_v44 = vmul.f32 1.442695, %v302_v41  ;;  %v399_v22 = vadd.s32 %v878_v11, %v387_v12  ;;  %v916_v40 = vadd.s32 %v878_v11, %v390_v18  ;;  %vm945_vm11 = vmand %vm408_vm1, %vm418_vm2 }
  0xb8   : > { %v645_v45 = vpop.eup %644  ;;  %v857_v46 = vpop.xlane.xlu0 %290  ;;  %v325_v47 = vsel %vm264_vm0, %v643_v42, 0.0  ;;  %v902_v25 = vadd.s32 %v878_v11, %v388_v13  ;;  %v392_v41 = vadd.s32 48, %v876_v8  ;;  %vm411_vm8 = vcmp.lt.s32.totalorder %v905_v28, 82 }
  0xb9   : > { %v860_v48 = vpop.xlane.xlu1 %293  ;;  %654 = vpow2.f32 %v317_v43  ;;  %v303_v49 = vsub.f32 %v242_v16, %v857_v46  ;;  %326 = vadd.xlane.f32.xlu0 %v325_v47  ;;  %v331_v51 = vsel %vm264_vm0, %v645_v45, 0.0  ;;  %vm409_vm4 = vcmp.lt.s32.totalorder %v399_v22, 82 }
  0xba   : > { %v304_v50 = vsub.f32 %v243_v17, %v860_v48  ;;  %656 = vpow2.f32 %v319_v44  ;;  %vm410_vm6 = vcmp.lt.s32.totalorder %v902_v25, 82  ;;  %v393_v44 = vadd.s32 56, %v876_v8 }
  0xbb   : > { %v647_v52 = vpop.eup %646  ;;  %v321_v53 = vmul.f32 1.442695, %v303_v49  ;;  %vm421_vm9 = vcmp.gt.f32.partialorder %v913_v37, 0.0  ;;  %vm412_vm10 = vcmp.lt.s32.totalorder %v916_v40, 82  ;;  %vm975_vm1 = vmand %vm410_vm6, %vm420_vm7 }
  0xbc   : > { %v323_v54 = vmul.f32 1.442695, %v304_v50  ;;  %v649_v55 = vpop.eup %648  ;;  %v328_v56 = vsel %vm264_vm0, %v647_v52, 0.0  ;;  %v930_v50 = vld [vmem:[%s884_s7 + $0x28] sm:$0xff] }
  0xbd   : > { %658 = vpow2.f32 %v321_v53  ;;  %332 = vadd.xlane.f32.xlu0 %v331_v51  ;;  %329 = vadd.xlane.f32.xlu1 %v328_v56  ;;  %v334_v57 = vsel %vm264_vm0, %v649_v55, 0.0  ;;  %v933_v51 = vadd.s32 %v878_v11, %v391_v31  ;;  %v938_v56 = vld [vmem:[%s884_s7 + $0x30] sm:$0xff]  ;;  %vm423_vm13 = vcmp.gt.f32.partialorder %v930_v50, 0.0 }
  0xbe   : > { %660 = vpow2.f32 %v323_v54  ;;  %v255_v54 = vld [vmem:[%s894_s10 + $0x8] sm:$0xff]  ;;  %vm424_vm15 = vcmp.gt.f32.partialorder %v938_v56, 0.0 }
  0xbf   : > { %v651_v58 = vpop.eup %650  ;;  %vm413_vm14 = vcmp.lt.s32.totalorder %v933_v51, 82 }
  0xc0   : > { %v653_v59 = vpop.eup %652  ;;  %v337_v60 = vsel %vm264_vm0, %v651_v58, 0.0 }
  0xc1   : > { %335 = vadd.xlane.f32.xlu1 %v334_v57  ;;  %338 = vadd.xlane.f32.xlu0 %v337_v60  ;;  %v340_v61 = vsel %vm264_vm0, %v653_v59, 0.0  ;;  %v941_v57 = vadd.s32 %v878_v11, %v392_v41 }
  0xc3   : > { %v655_v62 = vpop.eup %654  ;;  %vm414_vm2 = vcmp.lt.s32.totalorder %v941_v57, 82  ;;  %v263_v57 = vld [vmem:[%s894_s10 + $0x48] sm:$0xff] }
  0xc4   : > { %v657_v63 = vpop.eup %656  ;;  %v343_v0 = vsel %vm264_vm0, %v655_v62, 0.0  ;;  %v394_v62 = vadd.s32 64, %v876_v8 }
  0xc5   : > { %341 = vadd.xlane.f32.xlu1 %v340_v61  ;;  %344 = vadd.xlane.f32.xlu0 %v343_v0  ;;  %v346_v1 = vsel %vm264_vm0, %v657_v63, 0.0  ;;  %v256_v61 = vld [vmem:[%s894_s10 + $0x10] sm:$0xff] }
  0xc6   : > { %v982_v15 = vadd.s32 %v878_v11, %v394_v62 }
  0xc7   : > { %v659_v2 = vpop.eup %658 }
  0xc8   : > { %v661_v3 = vpop.eup %660  ;;  %v349_v4 = vsel %vm264_vm0, %v659_v2, 0.0  ;;  %vm416_vm7 = vcmp.lt.s32.totalorder %v982_v15, 82 }
  0xc9   : > { %347 = vadd.xlane.f32.xlu1 %v346_v1  ;;  %350 = vadd.xlane.f32.xlu0 %v349_v4  ;;  %v352_v5 = vsel %vm264_vm0, %v661_v3, 0.0  ;;  %v956_v1 = vadd.s32 %v878_v11, %v393_v44  ;;  %vm965_vm0 = vmand %vm409_vm4, %vm419_vm5 }
  0xca   : > { %vm1000_vm5 = vmand %vm411_vm8, %vm421_vm9 }
  0xcb   : > { %vm415_vm4 = vcmp.lt.s32.totalorder %v956_v1, 82  ;;  %vm1030_vm9 = vmand %vm413_vm14, %vm423_vm13 }
  0xcd   : > { %353 = vadd.xlane.f32.xlu1 %v352_v5 }
 0x146   : > { %v327_v7 = vpop.xlane.xlu0 %326 }
 0x147   : > { %662 = vlog2.f32 %v327_v7  ;;  %v257_v7 = vld [vmem:[%s894_s10 + $0x18] sm:$0xff] }
 0x14a   : > { %v330_v9 = vpop.xlane.xlu1 %329  ;;  %v333_v10 = vpop.xlane.xlu0 %332 }
 0x14b   : > { %664 = vlog2.f32 %v330_v9 }
 0x14c   : > { %666 = vlog2.f32 %v333_v10 }
 0x14e   : > { %v336_v16 = vpop.xlane.xlu1 %335  ;;  %v339_v17 = vpop.xlane.xlu0 %338 }
 0x14f   : > { %668 = vlog2.f32 %v336_v16 }
 0x150   : > { %670 = vlog2.f32 %v339_v17 }
 0x151   : > { %v663_v23 = vpop.eup %662 }
 0x152   : > { %v356_v29 = vmul.f32 0.6931472, %v663_v23  ;;  %v342_v34 = vpop.xlane.xlu1 %341  ;;  %v345_v35 = vpop.xlane.xlu0 %344 }
 0x153   : > { %672 = vlog2.f32 %v342_v34  ;;  %v259_v34 = vld [vmem:[%s894_s10 + $0x28] sm:$0xff] }
 0x154   : > { %v375_v42 = vadd.f32 %v356_v29, %v833_v20  ;;  %674 = vlog2.f32 %v345_v35  ;;  %v927_v20 = vld [vmem:[%s884_s7 + $0x20] sm:$0xff]  ;;  %v251_v29 = vld [vmem:[%s884_s7 + $0x38] sm:$0xff] }
 0x155   : > { %v665_v43 = vpop.eup %664  ;;  %vm422_vm12 = vcmp.gt.f32.partialorder %v927_v20, 0.0  ;;  %vm425_vm8 = vcmp.gt.f32.partialorder %v251_v29, 0.0 }
 0x156   : > { %v667_v45 = vpop.eup %666  ;;  %v438_v47 = vsub.f32 %v375_v42, %v254_v36  ;;  %v358_v49 = vmul.f32 0.6931472, %v665_v43  ;;  %v348_v52 = vpop.xlane.xlu1 %347  ;;  %vm1010_vm6 = vmand %vm412_vm10, %vm422_vm12  ;;  %v260_v43 = vld [vmem:[%s894_s10 + $0x30] sm:$0xff] }
 0x157   : > { %v351_v53 = vpop.xlane.xlu0 %350  ;;  %v360_v55 = vmul.f32 0.6931472, %v667_v45  ;;  %676 = vlog2.f32 %v348_v52  ;;  %vm1044_vm10 = vmand %vm414_vm2, %vm424_vm15 }
 0x158   : > { %v448_v59 = vmul.f32 %v438_v47, %v244_v19  ;;  %v376_v60 = vadd.f32 %v358_v49, %v839_v26  ;;  %678 = vlog2.f32 %v351_v53  ;;  %v395_v19 = vadd.s32 72, %v876_v8  ;;  %vm1057_vm13 = vmand %vm415_vm4, %vm425_vm8 }
 0x159   : > { %v669_v63 = vpop.eup %668  ;;  %v377_v0 = vadd.f32 %v360_v55, %v835_v21 }
 0x15a   : > { %v671_v2 = vpop.eup %670  ;;  %v439_v3 = vsub.f32 %v376_v60, %v255_v54  ;;  %v362_v4 = vmul.f32 0.6931472, %v669_v63  ;;  %v354_v26 = vpop.xlane.xlu1 %353  ;;  %v458_v5 = vsel %vm945_vm11, %v448_v59, 0.0  ;;  %v252_v54 = vld [vmem:[%s884_s7 + $0x40] sm:$0xff]  ;;  %v261_v59 = vld [vmem:[%s894_s10 + $0x38] sm:$0xff] }
 0x15b   : > { %v440_v6 = vsub.f32 %v377_v0, %v256_v61  ;;  %v364_v9 = vmul.f32 0.6931472, %v671_v2  ;;  %680 = vlog2.f32 %v354_v26  ;;  %v262_v0 = vld [vmem:[%s894_s10 + $0x40] sm:$0xff]  ;;  %v253_v2 = vld [vmem:[%s884_s7 + $0x48] sm:$0xff]  ;;  %vm426_vm11 = vcmp.gt.f32.partialorder %v252_v54, 0.0 }
 0x15c   : > { %v449_v10 = vmul.f32 %v439_v3, %v899_v24  ;;  %v378_v13 = vadd.f32 %v362_v4, %v841_v27  ;;  %v469_v27 = vsel %vm468_vm3, %v458_v5, 0.0  ;;  %v407_v3 = vadd.s32 %v878_v11, %v395_v19  ;;  %vm436_vm15 = vmand %vm416_vm7, %vm426_vm11 }
 0x15d   : > { %v673_v16 = vpop.eup %672  ;;  %v450_v17 = vmul.f32 %v440_v6, %v908_v30  ;;  %v379_v18 = vadd.f32 %v364_v9, %v845_v32  ;;  %vm427_vm12 = vcmp.gt.f32.partialorder %v253_v2, 0.0 }
 0x15e   : > { %v675_v22 = vpop.eup %674  ;;  %v459_v23 = vsel %vm965_vm0, %v449_v10, 0.0  ;;  %v441_v24 = vsub.f32 %v378_v13, %v257_v7  ;;  %v366_v25 = vmul.f32 0.6931472, %v673_v16  ;;  %vm417_vm14 = vcmp.lt.s32.totalorder %v407_v3, 82 }
 0x15f   : > { %v470_v31 = vsel %vm468_vm3, %v459_v23, 0.0  ;;  %v460_v30 = vsel %vm975_vm1, %v450_v17, 0.0  ;;  %v442_v8 = vsub.f32 %v379_v18, %v258_v14  ;;  %v368_v35 = vmul.f32 0.6931472, %v675_v22  ;;  %vm437_vm0 = vmand %vm417_vm14, %vm427_vm12 }
 0x160   : > { %v471_v36 = vadd.f32 %v470_v31, %v469_v27  ;;  %v451_v41 = vmul.f32 %v441_v24, %v913_v37  ;;  %v380_v28 = vadd.f32 %v366_v25, %v847_v33  ;;  %v472_v45 = vsel %vm468_vm3, %v460_v30, 0.0 }
 0x161   : > { %v677_v44 = vpop.eup %676  ;;  %v452_v47 = vmul.f32 %v442_v8, %v927_v20  ;;  %v381_v37 = vadd.f32 %v368_v35, %v851_v38 }
 0x162   : > { %v679_v40 = vpop.eup %678  ;;  %v473_v49 = vadd.f32 %v472_v45, %v471_v36  ;;  %v461_v52 = vsel %vm1000_vm5, %v451_v41, 0.0  ;;  %v443_v33 = vsub.f32 %v380_v28, %v259_v34  ;;  %v370_v53 = vmul.f32 0.6931472, %v677_v44 }
 0x163   : > { %v474_v55 = vsel %vm468_vm3, %v461_v52, 0.0  ;;  %v462_v58 = vsel %vm1010_vm6, %v452_v47, 0.0  ;;  %v444_v20 = vsub.f32 %v381_v37, %v260_v43  ;;  %v372_v60 = vmul.f32 0.6931472, %v679_v40 }
 0x164   : > { %v475_v61 = vadd.f32 %v474_v55, %v473_v49  ;;  %v453_v62 = vmul.f32 %v443_v33, %v930_v50  ;;  %v382_v63 = vadd.f32 %v370_v53, %v853_v39  ;;  %v476_v26 = vsel %vm468_vm3, %v462_v58, 0.0 }
 0x165   : > { %v681_v4 = vpop.eup %680  ;;  %v454_v50 = vmul.f32 %v444_v20, %v938_v56  ;;  %v383_v5 = vadd.f32 %v372_v60, %v857_v46 }
 0x166   : > { %v463_v39 = vsel %vm1030_vm9, %v453_v62, 0.0  ;;  %v445_v11 = vsub.f32 %v382_v63, %v261_v59  ;;  %v374_v21 = vmul.f32 0.6931472, %v681_v4  ;;  %v477_v6 = vadd.f32 %v476_v26, %v475_v61 }
 0x167   : > { %v446_v7 = vsub.f32 %v383_v5, %v262_v0  ;;  %v464_v46 = vsel %vm1044_vm10, %v454_v50, 0.0  ;;  %v478_v56 = vsel %vm468_vm3, %v463_v39, 0.0 }
 0x168   : > { %v455_v10 = vmul.f32 %v445_v11, %v251_v29  ;;  %v384_v12 = vadd.f32 %v374_v21, %v860_v48  ;;  %v479_v13 = vadd.f32 %v478_v56, %v477_v6  ;;  %v480_v1 = vsel %vm468_vm3, %v464_v46, 0.0 }
 0x169   : > { %v456_v14 = vmul.f32 %v446_v7, %v252_v54 }
 0x16a   : > { %v447_v16 = vsub.f32 %v384_v12, %v263_v57  ;;  %v465_v17 = vsel %vm1057_vm13, %v455_v10, 0.0  ;;  %v481_v18 = vadd.f32 %v480_v1, %v479_v13 }
 0x16b   : > { %v466_v19 = vsel %vm436_vm15, %v456_v14, 0.0  ;;  %v482_v22 = vsel %vm468_vm3, %v465_v17, 0.0 }
 0x16c   : > { %v457_v27 = vmul.f32 %v447_v16, %v253_v2  ;;  %v483_v48 = vadd.f32 %v482_v22, %v481_v18  ;;  %v484_v23 = vsel %vm468_vm3, %v466_v19, 0.0 }
 0x16e   : > { %v467_v15 = vsel %vm437_vm0, %v457_v27, 0.0  ;;  %v485_v24 = vadd.f32 %v484_v23, %v483_v48 }
 0x16f   : > { %v486_v25 = vsel %vm468_vm3, %v467_v15, 0.0 }
 0x170   : > { %v487_v29 = vadd.f32 %v486_v25, %v485_v24 }
 0x172   : > { %488 = vadd.xlane.f32.xlu0 %v487_v29 }
 0x1ff   : > { %v489_v31 = vpop.xlane.xlu0 %488 }
 0x200   : > { %v490_v30 = vrot.slane %v489_v31, 4 }
 0x202   : > { %v491_v32 = vadd.f32 %v490_v30, %v489_v31 }
 0x204   : > { %v492_v8 = vrot.slane %v491_v32, 2 }
 0x206   : > { %v493_v34 = vadd.f32 %v492_v8, %v491_v32 }
 0x208   : > { %v494_v35 = vrot.slane %v493_v34, 1 }
 0x20a   : > { %v495_v36 = vadd.f32 %v494_v35, %v493_v34 }
 0x20c   : > { %601 = vpush %v495_v36 }
 0x23d   : > { %s602_s24 = spop %601 }
 0x23e   : > { %v497_v41 = vstv %s602_s24 }
 0x23f   : > { %498 = vst [vmem:[%s207_s17] sm:$0x1] %v497_v41 }
 0x240   : > { %695 = shalt.err (!%p692_p4)
}
 0x241   : > { %s696_s5 = scalar_lea.hbm %s1080_s27, 16  ;;  %s700_s8 = scalar_lea.hbm %s1123_s3, 32 }
 0x242   : > { %p697_p7 = scmp.ne.s32.totalorder %s1080_s27, %s696_s5  ;;  %p701_p10 = scmp.lt.u32.totalorder %s1080_s27, %s1123_s3 }
 0x243   : > { %p702_p11 = scmp.lt.u32.totalorder %s700_s8, %s696_s5  ;;  %p704_p13 = scmp.lt.u32.totalorder %s696_s5, %s1080_s27 }
 0x244   : > { %p698_p8 = pnand %p697_p7, %p805_p5 }
 0x245   : > { %p703_p12 = por %p702_p11, %p701_p10 }
 0x246   : > { %p699_p9 = pneg %p698_p8 }
 0x247   : > { %p705_p0 = por %p704_p13, %p703_p12 }
 0x249   : > { %p706_p1 = pnand %p705_p0, %p699_p9 }
 0x24b   : > { %709 = shalt.err (!%p706_p1)
}
 0x24c   : > { %603 = dma.vmem_to_hbm [thread:$0]  (%p805_p5), %s1075_s19, 16, %s1080_s27, %s500_s28  }
 0x24d PF: > { %p609_p2 = scmp.ge.s32.totalorder %s744_s15, 2  ;;  %s524_s11 = sand.u32 1, %s732_s12  }
 0x24e   : > { %s525_s17 = scalar_lea.sflag [#allocation3], %s524_s11 }
 0x24f   : > { %p606_p3 = pnand %p609_p2, %p809_p6 }
 0x251   : > { %727 = dma.done.wait (!%p606_p3), %s525_s17, 16  }
 0x252   : > { %729 = vsyncadd (!%p606_p3), %s525_s17, 4294967280  ;;  %p13_p4 = scmp.ge.s32.totalorder %s792_s18, 4   ;;  %s1142_s12 = smov %s736_s13 }
 0x253   : > { %s1143_s13 = smov %s740_s14  ;;  %s1144_s14 = smov %s803_s21 }
 0x254   : > { %s1145_s15 = smov %s792_s18  ;;  %15 = sbr.rel (!%p13_p4) target bundleno = 3 (0x3), region = 73 }
 0x25b   :  { %529 = vsyncpa [#allocation3], 1 }
 0x25c   :  { %531 = vsyncpa [#allocation3 + $0x1], 1 }

</bundles_post_ra>
